<compile_context>
chip_gen: v7x
topology: tpu7x:2x2x1
jax: 0.10.0
libtpu: 0.0.40
codegen_flags: <defaults>
</compile_context>

<pallas_src>
import functools
import math

import jax
import jax.numpy as jnp
from jax.experimental import pallas as pl
from jax.experimental.pallas import tpu as pltpu

_LANE = 128
_SUBLANE = 8


def _round_up(n, m):
    return ((n + m - 1) // m) * m


def vanilla_rnn_kernel(x_ref, w_hx_ref, w_hh_ref, w_ph_ref, b_h_ref, b_p_ref,
                       p_ref):
    """Whole RNN recurrence + readout in one kernel (everything fits VMEM).

    x_ref    : (T*B, 128) f32  time-major, batch-padded, lane-padded input
    w_hx_ref : (128, H)   f32  (only row 0 nonzero: input_dim == 1)
    w_hh_ref : (H, H)     f32
    w_ph_ref : (H, C)     f32
    b_h_ref  : (1, H)     f32
    b_p_ref  : (1, C)     f32
    p_ref    : (B, C)     f32  output logits (lane-dense, padded C)
    H, C are multiples of 128; B is a multiple of 8.  Zero padding is
    numerically exact (padded hidden lanes stay exactly 0 through tanh).
    """
    B = p_ref.shape[0]
    T = x_ref.shape[0] // B

    # Input projection + hidden bias for ALL time steps in one lane-dense MXU
    # matmul, hoisted off the serial recurrence:
    #   x_proj[t*B:(t+1)*B] == x[:, t, None] * W_hx + b_h
    x_proj = (jnp.dot(x_ref[...], w_hx_ref[...],
                      preferred_element_type=jnp.float32)
              + b_h_ref[...])                                   # (T*B, H)

    # TODO(synk): weight-stationary MXU driving (pltpu.matmul_push_rhs /
    # matmul_acc_lhs / matmul_pop) could remove a per-step RHS push from the
    # serial chain; kept as jnp.dot until a bundle dump confirms Mosaic
    # actually re-pushes w_hh every step.

    # t = 0: h_prev == 0, so the recurrent matmul vanishes.
    h = jnp.tanh(x_proj[0:B])

    if T <= 16:
        # Small static T: full unroll; serial chain per step is one MXU dot
        # (ref-resident w_hh operand) + one EUP tanh; all x_proj slices are
        # static and sublane-aligned.
        for t in range(1, T):
            h = jnp.tanh(
                x_proj[t * B:(t + 1) * B]
                + jnp.dot(h, w_hh_ref[...],
                          preferred_element_type=jnp.float32))
    else:
        # Large T: bound live ranges / code size with a fori_loop + moderate
        # unroll (a static Python `for` would keep all slices live).
        def step(t, h):
            x_t = jax.lax.dynamic_slice_in_dim(x_proj, t * B, B, axis=0)
            return jnp.tanh(
                x_t + jnp.dot(h, w_hh_ref[...],
                              preferred_element_type=jnp.float32))

        h = jax.lax.fori_loop(1, T, step, h, unroll=4)

    # Readout: lane-dense store (C padded to a multiple of 128 -> unmasked vst).
    p_ref[...] = (jnp.dot(h, w_ph_ref[...], preferred_element_type=jnp.float32)
                  + b_p_ref[...]).astype(p_ref.dtype)


def prepare_params(w_hx, w_hh, w_ph, b_h, b_p):
    """Pad parameters to MXU/vreg-friendly shapes ONCE, outside the per-call
    path.  Zero fill is numerically exact."""
    I, H = w_hx.shape
    C = w_ph.shape[1]
    assert I == 1, "forward slices x[:, [t]] -> input_dim must be 1"
    Ip = _round_up(I, _LANE)   # contraction dim of the input projection
    Hp = _round_up(H, _LANE)
    Cp = _round_up(C, _LANE)

    return {
        "w_hx": jnp.zeros((Ip, Hp), jnp.float32).at[:I, :H].set(w_hx),
        "w_hh": jnp.zeros((Hp, Hp), jnp.float32).at[:H, :H].set(w_hh),
        "w_ph": jnp.zeros((Hp, Cp), jnp.float32).at[:H, :C].set(w_ph),
        "b_h":  jnp.zeros((1, Hp), jnp.float32).at[:, :H].set(b_h),
        "b_p":  jnp.zeros((1, Cp), jnp.float32).at[:, :C].set(b_p),
    }


@functools.partial(jax.jit, static_argnames=("num_classes",))
def vanilla_rnn_forward(x, params, *, num_classes):
    """Per-call path: only the x plumbing + pallas_call + cheap output slice."""
    B, T = x.shape
    Bp = _round_up(B, _SUBLANE)
    Ip = params["w_hx"].shape[0]
    Cp = params["w_ph"].shape[1]

    # Time-major, batch-padded, lane-padded so the in-kernel input projection
    # is a plain (T*Bp, 128) @ (128, Hp) MXU matmul and each time step is a
    # tile-aligned static sublane slice.
    x_tm = x.astype(jnp.float32).T                               # (T, B)
    if Bp != B:
        x_tm = jnp.pad(x_tm, ((0, 0), (0, Bp - B)))
    x_flat = jnp.pad(x_tm.reshape(T * Bp, 1), ((0, 0), (0, Ip - 1)))

    p_padded = pl.pallas_call(
        vanilla_rnn_kernel,
        out_shape=jax.ShapeDtypeStruct((Bp, Cp), jnp.float32),
        # Tiny problem: every operand is a single full-array VMEM block; no
        # grid to pipeline.  (For large B on v7x, add a batch grid axis with
        # dimension_semantics=("parallel",) so both TensorCores share work and
        # keep the per-block x_proj within the 64 MiB VMEM.)
        in_specs=[pl.BlockSpec(memory_space=pltpu.MemorySpace.VMEM)] * 6,
        out_specs=pl.BlockSpec(memory_space=pltpu.MemorySpace.VMEM),
    )(x_flat, params["w_hx"], params["w_hh"], params["w_ph"],
      params["b_h"], params["b_p"])

    # Lane-dense store inside the kernel; the slice here is far cheaper than a
    # masked partial-store path would be.
    return p_padded[:B, :num_classes]


def xavier_normal(key, shape):
    fan_in, fan_out = shape
    std = math.sqrt(2.0 / (fan_in + fan_out))
    return std * jax.random.normal(key, shape, dtype=jnp.float32)


def rnn_reference(x, w_hx, w_hh, w_ph, b_h, b_p):
    """Pure-JAX reference mirroring the PyTorch forward, for verification."""
    B = x.shape[0]
    h = jnp.zeros((B, w_hh.shape[0]), dtype=jnp.float32)
    for t in range(x.shape[1]):
        x_t = x[:, t:t + 1]
        h = jnp.tanh(x_t @ w_hx + h @ w_hh + b_h)
    return h @ w_ph + b_p


if __name__ == "__main__":
    # Small shapes consistent with the module (input_dim=1 implied by forward).
    batch, seq_length, input_dim, num_hidden, num_classes = 8, 8, 1, 32, 10

    key = jax.random.PRNGKey(0)
    k_x, k_hx, k_hh, k_ph = jax.random.split(key, 4)

    x = jax.random.normal(k_x, (batch, seq_length), dtype=jnp.float32)

    w_hx = xavier_normal(k_hx, (input_dim, num_hidden))
    w_hh = xavier_normal(k_hh, (num_hidden, num_hidden))
    w_ph = xavier_normal(k_ph, (num_hidden, num_classes))
    b_h = jnp.zeros((1, num_hidden), dtype=jnp.float32)
    b_p = jnp.zeros((1, num_classes), dtype=jnp.float32)

    # Pad weights ONCE (module "init"), not in the per-call path.
    params = prepare_params(w_hx, w_hh, w_ph, b_h, b_p)

    p = vanilla_rnn_forward(x, params, num_classes=num_classes)
    p = jax.block_until_ready(p)

    p_ref = rnn_reference(x, w_hx, w_hh, w_ph, b_h, b_p)
    assert p.shape == (batch, num_classes)
    assert jnp.allclose(p, p_ref, atol=1e-5, rtol=1e-5), (
        float(jnp.max(jnp.abs(p - p_ref))))

    print("KERNEL_OK")
</pallas_src>

<mosaic_0001>
module attributes {stable_mosaic.version = 11 : i64} {
  func.func @vanilla_rnn_kernel(%arg0: memref<64x128xf32, #tpu.memory_space<vmem>>, %arg1: memref<128x128xf32, #tpu.memory_space<vmem>>, %arg2: memref<128x128xf32, #tpu.memory_space<vmem>>, %arg3: memref<128x128xf32, #tpu.memory_space<vmem>>, %arg4: memref<1x128xf32, #tpu.memory_space<vmem>>, %arg5: memref<1x128xf32, #tpu.memory_space<vmem>>, %arg6: memref<8x128xf32, #tpu.memory_space<vmem>>) attributes {dimension_semantics = [], scalar_prefetch = 0 : i64, scratch_operands = 0 : i64, tpu.core_type = #tpu.core_type<tc>} {
    %c0 = arith.constant 0 : index
    %c0_0 = arith.constant 0 : index
    %0 = vector.load %arg0[%c0, %c0_0] : memref<64x128xf32, #tpu.memory_space<vmem>>, vector<64x128xf32>
    %c0_1 = arith.constant 0 : index
    %c0_2 = arith.constant 0 : index
    %1 = vector.load %arg1[%c0_1, %c0_2] : memref<128x128xf32, #tpu.memory_space<vmem>>, vector<128x128xf32>
    %cst = arith.constant dense<0.000000e+00> : vector<64x128xf32>
    %2 = tpu.matmul %0, %1, %cst {dimension_numbers = #tpu.dot_dimension_numbers<[1], [0], [0], [1], [0, 0, 1, 1], [], []>} : vector<64x128xf32>, vector<128x128xf32>, vector<64x128xf32> -> vector<64x128xf32>
    %c0_3 = arith.constant 0 : index
    %c0_4 = arith.constant 0 : index
    %3 = vector.load %arg4[%c0_3, %c0_4] : memref<1x128xf32, #tpu.memory_space<vmem>>, vector<1x128xf32>
    %4 = vector.broadcast %3 : vector<1x128xf32> to vector<64x128xf32>
    %5 = arith.addf %2, %4 : vector<64x128xf32>
    %6 = vector.extract_strided_slice %5 {offsets = [0, 0], sizes = [8, 128], strides = [1, 1]} : vector<64x128xf32> to vector<8x128xf32>
    %7 = math.tanh %6 : vector<8x128xf32>
    %8 = vector.extract_strided_slice %5 {offsets = [8, 0], sizes = [8, 128], strides = [1, 1]} : vector<64x128xf32> to vector<8x128xf32>
    %c0_5 = arith.constant 0 : index
    %c0_6 = arith.constant 0 : index
    %9 = vector.load %arg2[%c0_5, %c0_6] : memref<128x128xf32, #tpu.memory_space<vmem>>, vector<128x128xf32>
    %cst_7 = arith.constant dense<0.000000e+00> : vector<8x128xf32>
    %10 = tpu.matmul %7, %9, %cst_7 {dimension_numbers = #tpu.dot_dimension_numbers<[1], [0], [0], [1], [0, 0, 1, 1], [], []>} : vector<8x128xf32>, vector<128x128xf32>, vector<8x128xf32> -> vector<8x128xf32>
    %11 = arith.addf %8, %10 : vector<8x128xf32>
    %12 = math.tanh %11 : vector<8x128xf32>
    %13 = vector.extract_strided_slice %5 {offsets = [16, 0], sizes = [8, 128], strides = [1, 1]} : vector<64x128xf32> to vector<8x128xf32>
    %c0_8 = arith.constant 0 : index
    %c0_9 = arith.constant 0 : index
    %14 = vector.load %arg2[%c0_8, %c0_9] : memref<128x128xf32, #tpu.memory_space<vmem>>, vector<128x128xf32>
    %cst_10 = arith.constant dense<0.000000e+00> : vector<8x128xf32>
    %15 = tpu.matmul %12, %14, %cst_10 {dimension_numbers = #tpu.dot_dimension_numbers<[1], [0], [0], [1], [0, 0, 1, 1], [], []>} : vector<8x128xf32>, vector<128x128xf32>, vector<8x128xf32> -> vector<8x128xf32>
    %16 = arith.addf %13, %15 : vector<8x128xf32>
    %17 = math.tanh %16 : vector<8x128xf32>
    %18 = vector.extract_strided_slice %5 {offsets = [24, 0], sizes = [8, 128], strides = [1, 1]} : vector<64x128xf32> to vector<8x128xf32>
    %c0_11 = arith.constant 0 : index
    %c0_12 = arith.constant 0 : index
    %19 = vector.load %arg2[%c0_11, %c0_12] : memref<128x128xf32, #tpu.memory_space<vmem>>, vector<128x128xf32>
    %cst_13 = arith.constant dense<0.000000e+00> : vector<8x128xf32>
    %20 = tpu.matmul %17, %19, %cst_13 {dimension_numbers = #tpu.dot_dimension_numbers<[1], [0], [0], [1], [0, 0, 1, 1], [], []>} : vector<8x128xf32>, vector<128x128xf32>, vector<8x128xf32> -> vector<8x128xf32>
    %21 = arith.addf %18, %20 : vector<8x128xf32>
    %22 = math.tanh %21 : vector<8x128xf32>
    %23 = vector.extract_strided_slice %5 {offsets = [32, 0], sizes = [8, 128], strides = [1, 1]} : vector<64x128xf32> to vector<8x128xf32>
    %c0_14 = arith.constant 0 : index
    %c0_15 = arith.constant 0 : index
    %24 = vector.load %arg2[%c0_14, %c0_15] : memref<128x128xf32, #tpu.memory_space<vmem>>, vector<128x128xf32>
    %cst_16 = arith.constant dense<0.000000e+00> : vector<8x128xf32>
    %25 = tpu.matmul %22, %24, %cst_16 {dimension_numbers = #tpu.dot_dimension_numbers<[1], [0], [0], [1], [0, 0, 1, 1], [], []>} : vector<8x128xf32>, vector<128x128xf32>, vector<8x128xf32> -> vector<8x128xf32>
    %26 = arith.addf %23, %25 : vector<8x128xf32>
    %27 = math.tanh %26 : vector<8x128xf32>
    %28 = vector.extract_strided_slice %5 {offsets = [40, 0], sizes = [8, 128], strides = [1, 1]} : vector<64x128xf32> to vector<8x128xf32>
    %c0_17 = arith.constant 0 : index
    %c0_18 = arith.constant 0 : index
    %29 = vector.load %arg2[%c0_17, %c0_18] : memref<128x128xf32, #tpu.memory_space<vmem>>, vector<128x128xf32>
    %cst_19 = arith.constant dense<0.000000e+00> : vector<8x128xf32>
    %30 = tpu.matmul %27, %29, %cst_19 {dimension_numbers = #tpu.dot_dimension_numbers<[1], [0], [0], [1], [0, 0, 1, 1], [], []>} : vector<8x128xf32>, vector<128x128xf32>, vector<8x128xf32> -> vector<8x128xf32>
    %31 = arith.addf %28, %30 : vector<8x128xf32>
    %32 = math.tanh %31 : vector<8x128xf32>
    %33 = vector.extract_strided_slice %5 {offsets = [48, 0], sizes = [8, 128], strides = [1, 1]} : vector<64x128xf32> to vector<8x128xf32>
    %c0_20 = arith.constant 0 : index
    %c0_21 = arith.constant 0 : index
    %34 = vector.load %arg2[%c0_20, %c0_21] : memref<128x128xf32, #tpu.memory_space<vmem>>, vector<128x128xf32>
    %cst_22 = arith.constant dense<0.000000e+00> : vector<8x128xf32>
    %35 = tpu.matmul %32, %34, %cst_22 {dimension_numbers = #tpu.dot_dimension_numbers<[1], [0], [0], [1], [0, 0, 1, 1], [], []>} : vector<8x128xf32>, vector<128x128xf32>, vector<8x128xf32> -> vector<8x128xf32>
    %36 = arith.addf %33, %35 : vector<8x128xf32>
    %37 = math.tanh %36 : vector<8x128xf32>
    %38 = vector.extract_strided_slice %5 {offsets = [56, 0], sizes = [8, 128], strides = [1, 1]} : vector<64x128xf32> to vector<8x128xf32>
    %c0_23 = arith.constant 0 : index
    %c0_24 = arith.constant 0 : index
    %39 = vector.load %arg2[%c0_23, %c0_24] : memref<128x128xf32, #tpu.memory_space<vmem>>, vector<128x128xf32>
    %cst_25 = arith.constant dense<0.000000e+00> : vector<8x128xf32>
    %40 = tpu.matmul %37, %39, %cst_25 {dimension_numbers = #tpu.dot_dimension_numbers<[1], [0], [0], [1], [0, 0, 1, 1], [], []>} : vector<8x128xf32>, vector<128x128xf32>, vector<8x128xf32> -> vector<8x128xf32>
    %41 = arith.addf %38, %40 : vector<8x128xf32>
    %42 = math.tanh %41 : vector<8x128xf32>
    %c0_26 = arith.constant 0 : index
    %c0_27 = arith.constant 0 : index
    %43 = vector.load %arg3[%c0_26, %c0_27] : memref<128x128xf32, #tpu.memory_space<vmem>>, vector<128x128xf32>
    %cst_28 = arith.constant dense<0.000000e+00> : vector<8x128xf32>
    %44 = tpu.matmul %42, %43, %cst_28 {dimension_numbers = #tpu.dot_dimension_numbers<[1], [0], [0], [1], [0, 0, 1, 1], [], []>} : vector<8x128xf32>, vector<128x128xf32>, vector<8x128xf32> -> vector<8x128xf32>
    %c0_29 = arith.constant 0 : index
    %c0_30 = arith.constant 0 : index
    %45 = vector.load %arg5[%c0_29, %c0_30] : memref<1x128xf32, #tpu.memory_space<vmem>>, vector<1x128xf32>
    %46 = vector.broadcast %45 : vector<1x128xf32> to vector<8x128xf32>
    %47 = arith.addf %44, %46 : vector<8x128xf32>
    %c0_31 = arith.constant 0 : index
    %c0_32 = arith.constant 0 : index
    %48 = vector.load %arg6[%c0_31, %c0_32] : memref<8x128xf32, #tpu.memory_space<vmem>>, vector<8x128xf32>
    tpu.vector_store %arg6[%c0_31, %c0_32], %47 {strides = array<i32>} : memref<8x128xf32, #tpu.memory_space<vmem>>, vector<8x128xf32>,
    return
  }
}

</mosaic_0001>

<bundles_post_ra>
// kernel: vanilla_rnn_forward.1
= control target key start
LH: loop header
LB: loop body
LE: loop exit
PB: predicated region body
PF: predicated region fallthrough
CT: control target
= control target key end

     0   :  { %11 = vsyncpa [#allocation3], 0  ;;  %s1953_s0 = inlined_call_operand.vmem [shape: f32[64,128], index: 0, kind: input, shape index: {}]   ;;  %s1954_s1 = inlined_call_operand.vmem [shape: f32[128,128], index: 1, kind: input, shape index: {}]   ;;  %s1955_s2 = inlined_call_operand.hbm [shape: f32[128,128], index: 2, kind: input, shape index: {}]   ;;  %s1956_s3 = inlined_call_operand.hbm [shape: f32[128,128], index: 3, kind: input, shape index: {}]   ;;  %s1957_s4 = inlined_call_operand.vmem [shape: f32[1,128], index: 4, kind: input, shape index: {}]   ;;  %s1958_s5 = inlined_call_operand.vmem [shape: f32[1,128], index: 5, kind: input, shape index: {}]   ;;  %s1959_s6 = inlined_call_operand.hbm [shape: f32[8,128], index: 6, kind: output, shape index: {}]  }
   0x1   :  { %12 = vsyncpa [#allocation6], 0 }
   0x2   :  { %13 = vsyncpa [#allocation4], 0  ;;  %s1625_s21 = smov [#allocation2]   ;;  %s1553_s25 = scalar_lea.hbm %s1955_s2, 2048 }
   0x3   :  { %s23_s22 = sshll.u32 %s1625_s21, 4  ;;  %p1554_p0 = scmp.ne.s32.totalorder %s1955_s2, %s1553_s25  ;;  %s24_s22 = int_to_ptr.vmem [resolvable:$true] %s23_s22 }
   0x4   :  { %p1557_p1 = scmp.lt.u32.totalorder %s1553_s25, %s1955_s2 }
   0x6   :  { %p1559_p2 = pnand %p1557_p1, %p1554_p0 }
   0x8   :  { %1562 = shalt.err (!%p1559_p2)
}
   0x9   :  { %s1563_s30 = scalar_lea.vmem %s24_s22, 2048  ;;  %p1568_p4 = scmp.lt.s32.totalorder %s24_s22, %s24_s22 }
   0xa   :  { %p1564_p3 = scmp.ne.s32.totalorder %s24_s22, %s1563_s30  ;;  %p1569_p5 = scmp.lt.s32.totalorder %s1563_s30, %s1563_s30 }
   0xc   :  { %p1570_p6 = por %p1569_p5, %p1568_p4 }
   0xe   :  { %p1571_p7 = pnand %p1570_p6, %p1564_p3 }
  0x10   :  { %1574 = shalt.err (!%p1571_p7)
}
  0x11   :  { %s1626_s7 = smov 128   ;;  %s1627_s8 = smov 8  }
  0x12   :  { %29 = dma.hbm_to_vmem [thread:$0]  %s1955_s2, 2048, %s24_s22, [#allocation3], %s1626_s7, %s1626_s7, %s1627_s8  }
  0x13   :  { %s1628_s11 = smov [#allocation5]   ;;  %s1575_s15 = scalar_lea.hbm %s1956_s3, 2048 }
  0x14   :  { %s35_s12 = sshll.u32 %s1628_s11, 4  ;;  %p1576_p8 = scmp.ne.s32.totalorder %s1956_s3, %s1575_s15  ;;  %s36_s12 = int_to_ptr.vmem [resolvable:$true] %s35_s12 }
  0x15   :  { %p1579_p9 = scmp.lt.u32.totalorder %s1575_s15, %s1956_s3 }
  0x17   :  { %p1581_p10 = pnand %p1579_p9, %p1576_p8 }
  0x19   :  { %1584 = shalt.err (!%p1581_p10)
}
  0x1a   :  { %s1585_s20 = scalar_lea.vmem %s36_s12, 2048  ;;  %p1590_p12 = scmp.lt.s32.totalorder %s36_s12, %s36_s12 }
  0x1b   :  { %p1586_p11 = scmp.ne.s32.totalorder %s36_s12, %s1585_s20  ;;  %p1591_p13 = scmp.lt.s32.totalorder %s1585_s20, %s1585_s20 }
  0x1d   :  { %p1592_p0 = por %p1591_p13, %p1590_p12 }
  0x1f   :  { %p1593_p1 = pnand %p1592_p0, %p1586_p11 }
  0x21   :  { %1596 = shalt.err (!%p1593_p1)
}
  0x22   :  { %41 = dma.hbm_to_vmem [thread:$0]  %s1956_s3, 2048, %s36_s12, [#allocation6], %s1626_s7, %s1626_s7, %s1627_s8  }
  0x23   :  { %1619 = dma.done.wait [#allocation3], 2048  }
  0x24   :  { %1620 = vsyncadd [#allocation3], 4294965248 }
  0x25   :  { %1621 = dma.done.wait [#allocation6], 2048  }
  0x26   :  { %1622 = vsyncadd [#allocation6], 4294965248  ;;  %v1629_v0 = vmov 0.0|0.0   ;;  %v60_v1 = vld [vmem:[%s1954_s1] sm:$0xff]  ;;  %v61_v2 = vld [vmem:[%s1954_s1 + $0x8] sm:$0xff]  ;;  %vm1630_vm0 = vmmov 0  }
  0x27   :  { %1337 = vmatprep.subr.bf16.mxu1 %v1629_v0  ;;  %v62_v3 = vld [vmem:[%s1954_s1 + $0x10] sm:$0xff]  ;;  %v1305_v4 = vpack.c.bf16 %v61_v2, %v60_v1  ;;  %v63_v5 = vld [vmem:[%s1954_s1 + $0x18] sm:$0xff]  ;;  %v64_v7 = vld [vmem:[%s1954_s1 + $0x20] sm:$0xff]  ;;  %v1631_v50 = vmov 0.0   ;;  %s1632_s20 = smov [#allocation7]  }
  0x28   :  { %v1309_v6 = vpack.c.bf16 %v63_v5, %v62_v3  ;;  %v65_v8 = vld [vmem:[%s1954_s1 + $0x28] sm:$0xff]  ;;  %v66_v10 = vld [vmem:[%s1954_s1 + $0x30] sm:$0xff]  ;;  %v67_v11 = vld [vmem:[%s1954_s1 + $0x38] sm:$0xff]  ;;  %1057 = vmatprep.mubr.msk.f32.mxu1 %vm1630_vm0, %v1631_v50  ;;  %s809_s2 = sshll.u32 %s1632_s20, 4  ;;  %s810_s2 = int_to_ptr.vmem [resolvable:$true] %s809_s2 }
  0x29   :  { %1306 = vmatprep.subr.bf16.mxu0 %v1305_v4  ;;  %v1313_v9 = vpack.c.bf16 %v65_v8, %v64_v7  ;;  %v52_v12 = vld [vmem:[%s1953_s0] sm:$0xff]  ;;  %v190_v14 = vld [vmem:[#allocation2 + $0x8] sm:$0xff]  ;;  %v191_v15 = vld [vmem:[#allocation2 + $0x10] sm:$0xff]  ;;  %v1317_v18 = vpack.c.bf16 %v67_v11, %v66_v10  ;;  %s1597_s21 = scalar_lea.vmem %s810_s2, 128  ;;  %p1602_p3 = scmp.lt.s32.totalorder %s810_s2, %s810_s2 }
  0x2a   :  { %1308 = vmatpush3.bf16.msra.mxu0 %v1305_v4  ;;  %1013 = vmatprep.mubr.f32.mxu0 %v52_v12  ;;  %v189_v13 = vld [vmem:[#allocation2] sm:$0xff]  ;;  %v192_v17 = vld [vmem:[#allocation2 + $0x18] sm:$0xff]  ;;  %v69_v21 = vld [vmem:[%s1954_s1 + $0x48] sm:$0xff]  ;;  %p1598_p2 = scmp.ne.s32.totalorder %s810_s2, %s1597_s21  ;;  %p1603_p4 = scmp.lt.s32.totalorder %s1597_s21, %s1597_s21 }
  0x2b   :  { %1310 = vmatprep.subr.bf16.mxu0 %v1309_v6  ;;  %v1720_v16 = vpack.c.bf16 %v190_v14, %v189_v13  ;;  %v68_v19 = vld [vmem:[%s1954_s1 + $0x40] sm:$0xff]  ;;  %v1726_v20 = vpack.c.bf16 %v192_v17, %v191_v15  ;;  %v194_v23 = vld [vmem:[#allocation2 + $0x28] sm:$0xff]  ;;  %v70_v25 = vld [vmem:[%s1954_s1 + $0x50] sm:$0xff] }
  0x2c   :  { %v193_v22 = vld [vmem:[#allocation2 + $0x20] sm:$0xff]  ;;  %v1321_v24 = vpack.c.bf16 %v69_v21, %v68_v19  ;;  %v71_v27 = vld [vmem:[%s1954_s1 + $0x58] sm:$0xff]  ;;  %v195_v28 = vld [vmem:[#allocation2 + $0x30] sm:$0xff]  ;;  %p1604_p5 = por %p1603_p4, %p1602_p3 }
  0x2d   :  { %1339 = vmatpush3.bf16.msra.mxu1 %v1720_v16  ;;  %v1736_v26 = vpack.c.bf16 %v194_v23, %v193_v22  ;;  %v196_v29 = vld [vmem:[#allocation2 + $0x38] sm:$0xff]  ;;  %v1325_v30 = vpack.c.bf16 %v71_v27, %v70_v25  ;;  %v72_v32 = vld [vmem:[%s1954_s1 + $0x60] sm:$0xff]  ;;  %v73_v33 = vld [vmem:[%s1954_s1 + $0x68] sm:$0xff] }
  0x2e   :  { %1312 = vmatpush3.bf16.msra.mxu0 %v1309_v6  ;;  %1340 = vmatprep.subr.bf16.mxu1 %v1629_v0  ;;  %v1743_v31 = vpack.c.bf16 %v196_v29, %v195_v28  ;;  %v1329_v34 = vpack.c.bf16 %v73_v33, %v72_v32  ;;  %v74_v35 = vld [vmem:[%s1954_s1 + $0x70] sm:$0xff]  ;;  %v75_v36 = vld [vmem:[%s1954_s1 + $0x78] sm:$0xff]  ;;  %v53_v38 = vld [vmem:[%s1953_s0 + $0x8] sm:$0xff]  ;;  %p1605_p6 = pnand %p1604_p5, %p1598_p2 }
  0x2f   :  { %1314 = vmatprep.subr.bf16.mxu0 %v1313_v9  ;;  %v1333_v37 = vpack.c.bf16 %v75_v36, %v74_v35  ;;  %v197_v39 = vld [vmem:[#allocation2 + $0x40] sm:$0xff]  ;;  %v198_v40 = vld [vmem:[#allocation2 + $0x48] sm:$0xff]  ;;  %v199_v42 = vld [vmem:[#allocation2 + $0x50] sm:$0xff] }
  0x30   :  { %v1772_v41 = vpack.c.bf16 %v198_v40, %v197_v39  ;;  %v200_v43 = vld [vmem:[#allocation2 + $0x58] sm:$0xff]  ;;  %v201_v45 = vld [vmem:[#allocation2 + $0x60] sm:$0xff]  ;;  %v202_v46 = vld [vmem:[#allocation2 + $0x68] sm:$0xff] }
  0x31   :  { %1342 = vmatpush3.bf16.msra.mxu1 %v1726_v20  ;;  %v1778_v44 = vpack.c.bf16 %v200_v43, %v199_v42  ;;  %v1783_v47 = vpack.c.bf16 %v202_v46, %v201_v45  ;;  %v203_v48 = vld [vmem:[#allocation2 + $0x70] sm:$0xff]  ;;  %v204_v49 = vld [vmem:[#allocation2 + $0x78] sm:$0xff]  ;;  %v1804_v53 = vld [vmem:[%s1957_s4] ss:$0 sm:$0xff] }
  0x32   :  { %1316 = vmatpush3.bf16.msra.mxu0 %v1313_v9  ;;  %1343 = vmatprep.subr.bf16.mxu1 %v1629_v0  ;;  %v1789_v51 = vpack.c.bf16 %v204_v49, %v203_v48  ;;  %v54_v52 = vld [vmem:[%s1953_s0 + $0x10] sm:$0xff]  ;;  %v55_v58 = vld [vmem:[%s1953_s0 + $0x18] sm:$0xff]  ;;  %v56_v59 = vld [vmem:[%s1953_s0 + $0x20] sm:$0xff] }
  0x33   :  { %1318 = vmatprep.subr.bf16.mxu0 %v1317_v18  ;;  %v57_v60 = vld [vmem:[%s1953_s0 + $0x28] sm:$0xff]  ;;  %v58_v61 = vld [vmem:[%s1953_s0 + $0x30] sm:$0xff]  ;;  %v59_v62 = vld [vmem:[%s1953_s0 + $0x38] sm:$0xff] }
  0x34   :  { %v710_v32 = vld [vmem:[#allocation5 + $0x8] sm:$0xff]  ;;  %v711_v33 = vld [vmem:[#allocation5 + $0x10] sm:$0xff]  ;;  %v712_v35 = vld [vmem:[#allocation5 + $0x18] sm:$0xff] }
  0x35   :  { %1345 = vmatpush3.bf16.msra.mxu1 %v1736_v26  ;;  %v1509_v36 = vpack.c.bf16 %v712_v35, %v711_v33  ;;  %v715_v40 = vld [vmem:[#allocation5 + $0x30] sm:$0xff]  ;;  %v717_v43 = vld [vmem:[#allocation5 + $0x40] sm:$0xff] }
  0x36   :  { %1320 = vmatpush3.bf16.msra.mxu0 %v1317_v18  ;;  %1346 = vmatprep.subr.bf16.mxu1 %v1629_v0 }
  0x37   :  { %1322 = vmatprep.subr.bf16.mxu0 %v1321_v24 }
  0x39   :  { %1348 = vmatpush3.bf16.msra.mxu1 %v1743_v31 }
  0x3a   :  { %1324 = vmatpush3.bf16.msra.mxu0 %v1321_v24  ;;  %1349 = vmatprep.subr.bf16.mxu1 %v1629_v0 }
  0x3b   :  { %1326 = vmatprep.subr.bf16.mxu0 %v1325_v30 }
  0x3d   :  { %1351 = vmatpush3.bf16.msra.mxu1 %v1772_v41 }
  0x3e   :  { %1328 = vmatpush3.bf16.msra.mxu0 %v1325_v30  ;;  %1352 = vmatprep.subr.bf16.mxu1 %v1629_v0 }
  0x3f   :  { %1330 = vmatprep.subr.bf16.mxu0 %v1329_v34 }
  0x41   :  { %1354 = vmatpush3.bf16.msra.mxu1 %v1778_v44 }
  0x42   :  { %1332 = vmatpush3.bf16.msra.mxu0 %v1329_v34  ;;  %1355 = vmatprep.subr.bf16.mxu1 %v1629_v0 }
  0x43   :  { %1334 = vmatprep.subr.bf16.mxu0 %v1333_v37 }
  0x45   :  { %1357 = vmatpush3.bf16.msra.mxu1 %v1783_v47 }
  0x46   :  { %1336 = vmatpush3.bf16.msra.mxu0 %v1333_v37  ;;  %1358 = vmatprep.subr.bf16.mxu1 %v1629_v0  ;;  %v713_v37 = vld [vmem:[#allocation5 + $0x20] sm:$0xff] }
  0x47   :  { %1361 = vmatprep.subr.bf16.mxu0 %v1629_v0 }
  0x49   :  { %1014 = vmatmul.mubr.f32.vlgmr.msra.gmra.mrb[0].mxu0 %v53_v38  ;;  %1360 = vmatpush3.bf16.msra.mxu1 %v1789_v51  ;;  %v714_v38 = vld [vmem:[#allocation5 + $0x28] sm:$0xff] }
  0x4a   :  { %1363 = vmatpush3.bf16.msra.mxu0 %v1720_v16  ;;  %1385 = vmatprep.subr.bf16.mxu1 %v1629_v0  ;;  %v1512_v39 = vpack.c.bf16 %v714_v38, %v713_v37 }
  0x4b   :  { %1364 = vmatprep.subr.bf16.mxu0 %v1629_v0  ;;  %1016 = vmatprep.mubr.f32.mxu0 %v54_v52  ;;  %v720_v52 = vld [vmem:[#allocation5 + $0x58] sm:$0xff] }
  0x4d   :  { %1017 = vmatmul.mubr.f32.gmra.mrb[2].mxu0 %v55_v58  ;;  %v723_v58 = vld [vmem:[#allocation5 + $0x70] sm:$0xff] }
  0x4e   :  { %1366 = vmatpush3.bf16.msra.mxu0 %v1726_v20  ;;  %1019 = vmatprep.mubr.f32.mxu0 %v56_v59  ;;  %v724_v59 = vld [vmem:[#allocation5 + $0x78] sm:$0xff] }
  0x4f   :  { %1367 = vmatprep.subr.bf16.mxu0 %v1629_v0 }
  0x51   :  { %1020 = vmatmul.mubr.f32.gmra.mrb[4].mxu0 %v57_v60  ;;  %v1527_v60 = vpack.c.bf16 %v724_v59, %v723_v58 }
  0x52   :  { %1369 = vmatpush3.bf16.msra.mxu0 %v1736_v26  ;;  %1022 = vmatprep.mubr.f32.mxu0 %v58_v61 }
  0x53   :  { %1370 = vmatprep.subr.bf16.mxu0 %v1629_v0 }
  0x55   :  { %1023 = vmatmul.mubr.f32.gmra.mrb[6].mxu0 %v59_v62 }
  0x56   :  { %1372 = vmatpush3.bf16.msra.mxu0 %v1743_v31  ;;  %1092 = vmatprep.mubr.msk.f32.mxu0 %vm1630_vm0, %v1631_v50 }
  0x57   :  { %1373 = vmatprep.subr.bf16.mxu0 %v1629_v0 }
  0x5a   :  { %1375 = vmatpush3.bf16.msra.mxu0 %v1772_v41 }
  0x5b   :  { %1376 = vmatprep.subr.bf16.mxu0 %v1629_v0 }
  0x5e   :  { %1378 = vmatpush3.bf16.msra.mxu0 %v1778_v44 }
  0x5f   :  { %1379 = vmatprep.subr.bf16.mxu0 %v1629_v0 }
  0x62   :  { %1381 = vmatpush3.bf16.msra.mxu0 %v1783_v47 }
  0x63   :  { %1382 = vmatprep.subr.bf16.mxu0 %v1629_v0 }
  0x66   :  { %1384 = vmatpush3.bf16.msra.mxu0 %v1789_v51 }
  0x67   :  { %1409 = vmatprep.subr.bf16.mxu0 %v1629_v0 }
 0x11c   :  { %v1015_v54 = vpop.f32.mrb[0].mxu0 }
 0x11d   :  { %v149_v55 = vpop.f32.mrb[1].mxu0  ;;  %v155_v63 = vadd.f32 %v1015_v54, %v1804_v53 }
 0x11e   :  { %v150_v56 = vadd.f32 %v1804_v53, %v149_v55  ;;  %v721_v55 = vld [vmem:[#allocation5 + $0x60] sm:$0xff] }
 0x120   :  { %1537 = vtanh.f32 %v150_v56  ;;  %v1018_v5 = vpop.f32.mrb[2].mxu0  ;;  %v722_v56 = vld [vmem:[#allocation5 + $0x68] sm:$0xff] }
 0x121   :  { %v159_v6 = vpop.f32.mrb[3].mxu0  ;;  %v165_v17 = vadd.f32 %v1018_v5, %v1804_v53 }
 0x122   :  { %v160_v11 = vadd.f32 %v1804_v53, %v159_v6 }
 0x124   :  { %v1861_v7 = vpop.f32.mrb[4].mxu0 }
 0x125   :  { %v169_v8 = vpop.f32.mrb[5].mxu0 }
 0x126   :  { %v170_v23 = vadd.f32 %v1804_v53, %v169_v8 }
 0x128   :  { %v1863_v9 = vpop.f32.mrb[6].mxu0 }
 0x129   :  { %v1865_v10 = vpop.f32.mrb[7].mxu0  ;;  %v185_v61 = vadd.f32 %v1863_v9, %v1804_v53 }
 0x12a   :  { %v1538_v57 = vpop.eup %1537  ;;  %v180_v46 = vadd.f32 %v1804_v53, %v1865_v10 }
 0x12b   :  { %1058 = vmatmul.mubr.f32.vlgmr.msra.gmra.mrb[0].mxu1 %v1538_v57  ;;  %v1524_v57 = vpack.c.bf16 %v722_v56, %v721_v55 }
 0x12c   :  { %1387 = vmatpush3.bf16.msra.mxu1 %v1720_v16  ;;  %1127 = vmatprep.mubr.msk.f32.mxu1 %vm1630_vm0, %v1631_v50 }
 0x12d   :  { %1388 = vmatprep.subr.bf16.mxu1 %v1629_v0 }
 0x130   :  { %1390 = vmatpush3.bf16.msra.mxu1 %v1726_v20 }
 0x131   :  { %1391 = vmatprep.subr.bf16.mxu1 %v1629_v0 }
 0x134   :  { %1393 = vmatpush3.bf16.msra.mxu1 %v1736_v26 }
 0x135   :  { %1394 = vmatprep.subr.bf16.mxu1 %v1629_v0 }
 0x138   :  { %1396 = vmatpush3.bf16.msra.mxu1 %v1743_v31 }
 0x139   :  { %1397 = vmatprep.subr.bf16.mxu1 %v1629_v0 }
 0x13c   :  { %1399 = vmatpush3.bf16.msra.mxu1 %v1772_v41 }
 0x13d   :  { %1400 = vmatprep.subr.bf16.mxu1 %v1629_v0 }
 0x140   :  { %1402 = vmatpush3.bf16.msra.mxu1 %v1778_v44 }
 0x141   :  { %1403 = vmatprep.subr.bf16.mxu1 %v1629_v0 }
 0x144   :  { %1405 = vmatpush3.bf16.msra.mxu1 %v1783_v47 }
 0x145   :  { %1406 = vmatprep.subr.bf16.mxu1 %v1629_v0 }
 0x148   :  { %1408 = vmatpush3.bf16.msra.mxu1 %v1789_v51 }
 0x149   :  { %1433 = vmatprep.subr.bf16.mxu1 %v1629_v0 }
 0x1fe   :  { %v271_v1 = vpop.f32.mrb[0].mxu1 }
 0x1ff   :  { %v275_v2 = vadd.f32 %v271_v1, %v155_v63  ;;  %v1059_v3 = vpop.f32.mrb[1].mxu1 }
 0x200   :  { %v820_v3 = vld [vmem:[%s1958_s5] ss:$0 sm:$0xff] }
 0x201   :  { %1539 = vtanh.f32 %v275_v2 }
 0x20b   :  { %v1540_v4 = vpop.eup %1539 }
 0x20c   :  { %1093 = vmatmul.mubr.f32.vlgmr.msra.gmra.mrb[8].mxu0 %v1540_v4 }
 0x20d   :  { %1411 = vmatpush3.bf16.msra.mxu0 %v1720_v16  ;;  %1162 = vmatprep.mubr.msk.f32.mxu0 %vm1630_vm0, %v1631_v50 }
 0x20e   :  { %1412 = vmatprep.subr.bf16.mxu0 %v1629_v0 }
 0x211   :  { %1414 = vmatpush3.bf16.msra.mxu0 %v1726_v20 }
 0x212   :  { %1415 = vmatprep.subr.bf16.mxu0 %v1629_v0 }
 0x215   :  { %1417 = vmatpush3.bf16.msra.mxu0 %v1736_v26 }
 0x216   :  { %1418 = vmatprep.subr.bf16.mxu0 %v1629_v0 }
 0x219   :  { %1420 = vmatpush3.bf16.msra.mxu0 %v1743_v31 }
 0x21a   :  { %1421 = vmatprep.subr.bf16.mxu0 %v1629_v0 }
 0x21d   :  { %1423 = vmatpush3.bf16.msra.mxu0 %v1772_v41 }
 0x21e   :  { %1424 = vmatprep.subr.bf16.mxu0 %v1629_v0 }
 0x221   :  { %1426 = vmatpush3.bf16.msra.mxu0 %v1778_v44 }
 0x222   :  { %1427 = vmatprep.subr.bf16.mxu0 %v1629_v0 }
 0x225   :  { %1429 = vmatpush3.bf16.msra.mxu0 %v1783_v47 }
 0x226   :  { %1430 = vmatprep.subr.bf16.mxu0 %v1629_v0 }
 0x229   :  { %1432 = vmatpush3.bf16.msra.mxu0 %v1789_v51 }
 0x22a   :  { %1457 = vmatprep.subr.bf16.mxu0 %v1629_v0 }
 0x2df   :  { %v343_v12 = vpop.f32.mrb[8].mxu0 }
 0x2e0   :  { %v347_v13 = vadd.f32 %v343_v12, %v160_v11  ;;  %v1094_v14 = vpop.f32.mrb[9].mxu0 }
 0x2e2   :  { %1541 = vtanh.f32 %v347_v13 }
 0x2ec   :  { %v1542_v15 = vpop.eup %1541 }
 0x2ed   :  { %1128 = vmatmul.mubr.f32.vlgmr.msra.gmra.mrb[2].mxu1 %v1542_v15 }
 0x2ee   :  { %1435 = vmatpush3.bf16.msra.mxu1 %v1720_v16  ;;  %1197 = vmatprep.mubr.msk.f32.mxu1 %vm1630_vm0, %v1631_v50 }
 0x2ef   :  { %1436 = vmatprep.subr.bf16.mxu1 %v1629_v0 }
 0x2f2   :  { %1438 = vmatpush3.bf16.msra.mxu1 %v1726_v20 }
 0x2f3   :  { %1439 = vmatprep.subr.bf16.mxu1 %v1629_v0 }
 0x2f6   :  { %1441 = vmatpush3.bf16.msra.mxu1 %v1736_v26 }
 0x2f7   :  { %1442 = vmatprep.subr.bf16.mxu1 %v1629_v0 }
 0x2fa   :  { %1444 = vmatpush3.bf16.msra.mxu1 %v1743_v31 }
 0x2fb   :  { %1445 = vmatprep.subr.bf16.mxu1 %v1629_v0 }
 0x2fe   :  { %1447 = vmatpush3.bf16.msra.mxu1 %v1772_v41 }
 0x2ff   :  { %1448 = vmatprep.subr.bf16.mxu1 %v1629_v0 }
 0x302   :  { %1450 = vmatpush3.bf16.msra.mxu1 %v1778_v44 }
 0x303   :  { %1451 = vmatprep.subr.bf16.mxu1 %v1629_v0 }
 0x306   :  { %1453 = vmatpush3.bf16.msra.mxu1 %v1783_v47 }
 0x307   :  { %1454 = vmatprep.subr.bf16.mxu1 %v1629_v0 }
 0x30a   :  { %1456 = vmatpush3.bf16.msra.mxu1 %v1789_v51 }
 0x30b   :  { %1481 = vmatprep.subr.bf16.mxu1 %v1629_v0 }
 0x3c0   :  { %v415_v18 = vpop.f32.mrb[2].mxu1 }
 0x3c1   :  { %v419_v19 = vadd.f32 %v415_v18, %v165_v17  ;;  %v1129_v21 = vpop.f32.mrb[3].mxu1 }
 0x3c3   :  { %1543 = vtanh.f32 %v419_v19 }
 0x3cd   :  { %v1544_v22 = vpop.eup %1543 }
 0x3ce   :  { %1163 = vmatmul.mubr.f32.vlgmr.msra.gmra.mrb[10].mxu0 %v1544_v22 }
 0x3cf   :  { %1459 = vmatpush3.bf16.msra.mxu0 %v1720_v16  ;;  %1232 = vmatprep.mubr.msk.f32.mxu0 %vm1630_vm0, %v1631_v50 }
 0x3d0   :  { %1460 = vmatprep.subr.bf16.mxu0 %v1629_v0 }
 0x3d3   :  { %1462 = vmatpush3.bf16.msra.mxu0 %v1726_v20 }
 0x3d4   :  { %1463 = vmatprep.subr.bf16.mxu0 %v1629_v0 }
 0x3d7   :  { %1465 = vmatpush3.bf16.msra.mxu0 %v1736_v26 }
 0x3d8   :  { %1466 = vmatprep.subr.bf16.mxu0 %v1629_v0 }
 0x3db   :  { %1468 = vmatpush3.bf16.msra.mxu0 %v1743_v31 }
 0x3dc   :  { %1469 = vmatprep.subr.bf16.mxu0 %v1629_v0 }
 0x3df   :  { %1471 = vmatpush3.bf16.msra.mxu0 %v1772_v41 }
 0x3e0   :  { %1472 = vmatprep.subr.bf16.mxu0 %v1629_v0 }
 0x3e3   :  { %1474 = vmatpush3.bf16.msra.mxu0 %v1778_v44 }
 0x3e4   :  { %1475 = vmatprep.subr.bf16.mxu0 %v1629_v0 }
 0x3e7   :  { %1477 = vmatpush3.bf16.msra.mxu0 %v1783_v47 }
 0x3e8   :  { %1478 = vmatprep.subr.bf16.mxu0 %v1629_v0 }
 0x3eb   :  { %1480 = vmatpush3.bf16.msra.mxu0 %v1789_v51 }
 0x3ec   :  { %1505 = vmatprep.subr.bf16.mxu0 %v1629_v0 }
 0x4a1   :  { %v487_v24 = vpop.f32.mrb[10].mxu0 }
 0x4a2   :  { %v491_v25 = vadd.f32 %v487_v24, %v170_v23  ;;  %v1164_v27 = vpop.f32.mrb[11].mxu0 }
 0x4a4   :  { %1545 = vtanh.f32 %v491_v25 }
 0x4ae   :  { %v1546_v28 = vpop.eup %1545 }
 0x4af   :  { %1198 = vmatmul.mubr.f32.vlgmr.msra.gmra.mrb[4].mxu1 %v1546_v28 }
 0x4b0   :  { %1483 = vmatpush3.bf16.msra.mxu1 %v1720_v16  ;;  %1267 = vmatprep.mubr.msk.f32.mxu1 %vm1630_vm0, %v1631_v50  ;;  %v175_v16 = vadd.f32 %v1861_v7, %v1804_v53 }
 0x4b1   :  { %1484 = vmatprep.subr.bf16.mxu1 %v1629_v0 }
 0x4b4   :  { %1486 = vmatpush3.bf16.msra.mxu1 %v1726_v20 }
 0x4b5   :  { %1487 = vmatprep.subr.bf16.mxu1 %v1629_v0 }
 0x4b8   :  { %1489 = vmatpush3.bf16.msra.mxu1 %v1736_v26 }
 0x4b9   :  { %1490 = vmatprep.subr.bf16.mxu1 %v1629_v0 }
 0x4bc   :  { %1492 = vmatpush3.bf16.msra.mxu1 %v1743_v31  ;;  %v709_v31 = vld [vmem:[#allocation5] sm:$0xff] }
 0x4bd   :  { %1493 = vmatprep.subr.bf16.mxu1 %v1629_v0  ;;  %v1506_v34 = vpack.c.bf16 %v710_v32, %v709_v31 }
 0x4c0   :  { %1495 = vmatpush3.bf16.msra.mxu1 %v1772_v41  ;;  %v716_v41 = vld [vmem:[#allocation5 + $0x38] sm:$0xff] }
 0x4c1   :  { %1496 = vmatprep.subr.bf16.mxu1 %v1629_v0  ;;  %v1515_v42 = vpack.c.bf16 %v716_v41, %v715_v40 }
 0x4c4   :  { %1498 = vmatpush3.bf16.msra.mxu1 %v1778_v44  ;;  %v718_v44 = vld [vmem:[#allocation5 + $0x48] sm:$0xff] }
 0x4c5   :  { %1499 = vmatprep.subr.bf16.mxu1 %v1629_v0  ;;  %v1518_v45 = vpack.c.bf16 %v718_v44, %v717_v43 }
 0x4c8   :  { %1501 = vmatpush3.bf16.msra.mxu1 %v1783_v47 }
 0x4c9   :  { %1502 = vmatprep.subr.bf16.mxu1 %v1629_v0 }
 0x4cc   :  { %1504 = vmatpush3.bf16.msra.mxu1 %v1789_v51  ;;  %v719_v51 = vld [vmem:[#allocation5 + $0x50] sm:$0xff] }
 0x4cd   :  { %v1521_v54 = vpack.c.bf16 %v720_v52, %v719_v51 }
 0x582   :  { %v559_v20 = vpop.f32.mrb[4].mxu1 }
 0x583   :  { %v563_v26 = vadd.f32 %v559_v20, %v175_v16  ;;  %v1199_v29 = vpop.f32.mrb[5].mxu1 }
 0x585   :  { %1547 = vtanh.f32 %v563_v26 }
 0x58f   :  { %v1548_v30 = vpop.eup %1547 }
 0x590   :  { %1233 = vmatmul.mubr.f32.vlgmr.msra.gmra.mrb[12].mxu0 %v1548_v30 }
 0x591   :  { %1302 = vmatprep.mubr.msk.f32.mxu0 %vm1630_vm0, %v1631_v50  ;;  %1507 = vmatpush3.bf16.msra.mxu0 %v1506_v34 }
 0x592   :  { %1508 = vmatprep.subr.bf16.mxu0 %v1629_v0 }
 0x595   :  { %1510 = vmatpush3.bf16.msra.mxu0 %v1509_v36 }
 0x596   :  { %1511 = vmatprep.subr.bf16.mxu0 %v1629_v0 }
 0x599   :  { %1513 = vmatpush3.bf16.msra.mxu0 %v1512_v39 }
 0x59a   :  { %1514 = vmatprep.subr.bf16.mxu0 %v1629_v0 }
 0x59d   :  { %1516 = vmatpush3.bf16.msra.mxu0 %v1515_v42 }
 0x59e   :  { %1517 = vmatprep.subr.bf16.mxu0 %v1629_v0 }
 0x5a1   :  { %1519 = vmatpush3.bf16.msra.mxu0 %v1518_v45 }
 0x5a2   :  { %1520 = vmatprep.subr.bf16.mxu0 %v1629_v0 }
 0x5a5   :  { %1522 = vmatpush3.bf16.msra.mxu0 %v1521_v54 }
 0x5a6   :  { %1523 = vmatprep.subr.bf16.mxu0 %v1629_v0 }
 0x5a9   :  { %1525 = vmatpush3.bf16.msra.mxu0 %v1524_v57 }
 0x5aa   :  { %1526 = vmatprep.subr.bf16.mxu0 %v1629_v0 }
 0x5ad   :  { %1528 = vmatpush3.bf16.msra.mxu0 %v1527_v60 }
 0x663   :  { %v631_v47 = vpop.f32.mrb[12].mxu0 }
 0x664   :  { %v635_v48 = vadd.f32 %v631_v47, %v180_v46  ;;  %v1234_v49 = vpop.f32.mrb[13].mxu0 }
 0x666   :  { %1549 = vtanh.f32 %v635_v48 }
 0x670   :  { %v1550_v50 = vpop.eup %1549 }
 0x671   :  { %1268 = vmatmul.mubr.f32.vlgmr.msra.gmra.mrb[6].mxu1 %v1550_v50 }
 0x744   :  { %v703_v62 = vpop.f32.mrb[6].mxu1 }
 0x745   :  { %v707_v63 = vadd.f32 %v703_v62, %v185_v61  ;;  %v1269_v1 = vpop.f32.mrb[7].mxu1 }
 0x747   :  { %1551 = vtanh.f32 %v707_v63 }
 0x751   :  { %v1552_v2 = vpop.eup %1551 }
 0x752   :  { %1303 = vmatmul.mubr.f32.vlgmr.msra.gmra.mrb[14].mxu0 %v1552_v2 }
 0x825   :  { %v798_v4 = vpop.f32.mrb[14].mxu0 }
 0x826   :  { %v799_v5 = vadd.f32 %v820_v3, %v798_v4  ;;  %v1304_v6 = vpop.f32.mrb[15].mxu0 }
 0x828   :  { %802 = vst [vmem:[#allocation7] sm:$0xff] %v799_v5 }
 0x829   :  { %1608 = shalt.err (!%p1605_p6)
}
 0x82a   :  { %s1609_s24 = scalar_lea.hbm %s1959_s6, 128 }
 0x82b   :  { %p1610_p7 = scmp.ne.s32.totalorder %s1959_s6, %s1609_s24  ;;  %p1613_p8 = scmp.lt.u32.totalorder %s1609_s24, %s1959_s6 }
 0x82d   :  { %p1615_p9 = pnand %p1613_p8, %p1610_p7 }
 0x82f   :  { %1618 = shalt.err (!%p1615_p9)
}
 0x830   :  { %812 = dma.vmem_to_hbm [thread:$0]  %s810_s2, 128, %s1959_s6, [#allocation4]  }
 0x831   :  { %1623 = dma.done.wait [#allocation4], 128  }
 0x832   :  { %1624 = vsyncadd [#allocation4], 4294967168 }
 0x833   :  { %816 = vsyncpa [#allocation3], 1 }
 0x834   :  { %817 = vsyncpa [#allocation6], 1 }
 0x835   :  { %818 = vsyncpa [#allocation4], 1 }

</bundles_post_ra>
